<compile_context>
chip_gen: v5e
topology: v5e:2x2
jax: 0.10.0
libtpu: 0.0.40
codegen_flags: <defaults>
</compile_context>

<pallas_src>
import functools

import jax
import jax.numpy as jnp
from jax import lax
from jax.experimental import pallas as pl
from jax.experimental.pallas import tpu as pltpu


def _round_up(x: int, m: int) -> int:
    return (x + m - 1) // m * m


def _cls_head_kernel(x_ref, w1_ref, b1_ref, w2_ref, b2_ref, o_ref):
    # proj_in: x @ W1^T  (contract the H_in axes; no transpose materialized),
    # bf16 operands, f32 accumulation.
    h = lax.dot_general(
        x_ref[...], w1_ref[...],
        dimension_numbers=(((1,), (1,)), ((), ())),
        preferred_element_type=jnp.float32)
    # bias + ReLU in f32
    h = jnp.maximum(h + b1_ref[...], 0.0)
    # dropout: p = 0.0 -> identity (eval semantics of the reference module)
    # proj_out: h @ W2^T  (bf16 operands for the MXU, f32 accumulation)
    out = lax.dot_general(
        h.astype(w2_ref.dtype), w2_ref[...],
        dimension_numbers=(((1,), (1,)), ((), ())),
        preferred_element_type=jnp.float32)
    o_ref[...] = (out + b2_ref[...]).astype(o_ref.dtype)


def _pad2(a, shape):
    if a.shape == shape:
        return a
    return jnp.pad(a, ((0, shape[0] - a.shape[0]), (0, shape[1] - a.shape[1])))


@functools.partial(jax.jit, static_argnames=("tm",))
def classification_head(x, w1, b1, w2, b2, *, tm: int = 512):
    """x: [M, H]; w1: [H, H]; b1: [H]; w2: [C, H]; b2: [C] (PyTorch Linear layout)."""
    M, H = x.shape
    C = w2.shape[0]
    compute_dtype = jnp.bfloat16

    # Lane-dense padding (no-op when already aligned); padded rows/cols are
    # zero so they contribute exactly zero and are sliced off afterwards.
    HP = _round_up(H, 128)
    CP = _round_up(C, 128)
    TM = min(tm, _round_up(M, 8))
    MP = _round_up(M, TM)

    xp = _pad2(x.astype(compute_dtype), (MP, HP))
    w1p = _pad2(w1.astype(compute_dtype), (HP, HP))
    w2p = _pad2(w2.astype(compute_dtype), (CP, HP))
    b1p = _pad2(b1.astype(jnp.float32).reshape(1, H), (1, HP))
    b2p = _pad2(b2.astype(jnp.float32).reshape(1, C), (1, CP))

    # Rough VMEM budget: double-buffered x/out tiles + resident weights.
    # Only raise the scoped limit when the default (32 MiB) would not fit.
    itemsz = jnp.dtype(compute_dtype).itemsize
    vmem_est = (2 * TM * HP * itemsz        # double-buffered x tile
                + HP * HP * itemsz          # resident W1
                + CP * HP * itemsz          # resident W2
                + (HP + CP) * 4             # biases
                + 2 * TM * CP * 4           # double-buffered out tile
                + TM * HP * 4)              # f32 intermediate h
    vmem_limit = None
    if (vmem_est * 5) // 4 > 32 * 1024 * 1024:
        vmem_limit = int(min((vmem_est * 5) // 4, 100 * 1024 * 1024))

    out = pl.pallas_call(
        _cls_head_kernel,
        out_shape=jax.ShapeDtypeStruct((MP, CP), x.dtype),
        grid_spec=pltpu.PrefetchScalarGridSpec(
            num_scalar_prefetch=0,
            grid=(MP // TM,),
            in_specs=[
                pl.BlockSpec((TM, HP), lambda i: (i, 0)),  # x tile (streamed)
                pl.BlockSpec((HP, HP), lambda i: (0, 0)),  # W1 (VMEM-resident)
                pl.BlockSpec((1, HP), lambda i: (0, 0)),   # b1
                pl.BlockSpec((CP, HP), lambda i: (0, 0)),  # W2 (VMEM-resident)
                pl.BlockSpec((1, CP), lambda i: (0, 0)),   # b2
            ],
            out_specs=pl.BlockSpec((TM, CP), lambda i: (i, 0)),
        ),
        compiler_params=pltpu.CompilerParams(
            dimension_semantics=("parallel",),
            vmem_limit_bytes=vmem_limit),
    )(xp, w1p, b1p, w2p, b2p)

    return out[:M, :C]


if __name__ == "__main__":
    # Small shapes consistent with the module: batch=2, seq=8, hidden=32, classes=8
    batch, seq, num_hiddens, num_classes = 2, 8, 32, 8
    init_std, init_bias = 0.02, 0.0

    key = jax.random.PRNGKey(0)
    kx, kw1, kw2 = jax.random.split(key, 3)

    x = jax.random.normal(kx, (batch, seq, num_hiddens), dtype=jnp.float32)

    # Deterministic parameter init matching _init_weights: N(0, 0.02), bias = 0.0
    w1 = init_std * jax.random.normal(kw1, (num_hiddens, num_hiddens), dtype=jnp.float32)
    b1 = jnp.full((num_hiddens,), init_bias, dtype=jnp.float32)
    w2 = init_std * jax.random.normal(kw2, (num_classes, num_hiddens), dtype=jnp.float32)
    b2 = jnp.full((num_classes,), init_bias, dtype=jnp.float32)

    # Flatten leading dims -> [M, H]; restore afterwards.
    x2d = x.reshape(batch * seq, num_hiddens)
    out2d = classification_head(x2d, w1, b1, w2, b2)
    out = out2d.reshape(batch, seq, num_classes)
    jax.block_until_ready(out)

    # Reference in plain JAX with the same bf16 operand rounding / f32 accumulation.
    xb = x2d.astype(jnp.bfloat16).astype(jnp.float32)
    w1b = w1.astype(jnp.bfloat16).astype(jnp.float32)
    w2b = w2.astype(jnp.bfloat16).astype(jnp.float32)
    h_ref = jnp.maximum(xb @ w1b.T + b1, 0.0)
    h_ref = h_ref.astype(jnp.bfloat16).astype(jnp.float32)
    ref = (h_ref @ w2b.T + b2).reshape(batch, seq, num_classes)
    assert jnp.allclose(out, ref, atol=2e-4, rtol=2e-3), "mismatch vs reference"

    # Sanity: also close to the full-f32 reference.
    ref_f32 = (jnp.maximum(x2d @ w1.T + b1, 0.0) @ w2.T + b2).reshape(batch, seq, num_classes)
    assert jnp.allclose(out, ref_f32, atol=5e-3, rtol=5e-2), "mismatch vs f32 reference"

    print("KERNEL_OK")
</pallas_src>

<mosaic_0001>
module attributes {stable_mosaic.version = 11 : i64} {
  func.func @_cls_head_kernel(%arg0: i32, %arg1: memref<16x128xbf16, #tpu.memory_space<vmem>>, %arg2: memref<128x128xbf16, #tpu.memory_space<vmem>>, %arg3: memref<1x128xf32, #tpu.memory_space<vmem>>, %arg4: memref<128x128xbf16, #tpu.memory_space<vmem>>, %arg5: memref<1x128xf32, #tpu.memory_space<vmem>>, %arg6: memref<16x128xf32, #tpu.memory_space<vmem>>) attributes {dimension_semantics = [#tpu.dimension_semantics<parallel>], iteration_bounds = array<i64: 1>, scalar_prefetch = 0 : i64, scratch_operands = 0 : i64, tpu.core_type = #tpu.core_type<tc>, window_params = [{transform_indices = @transform_0, window_bounds = array<i64: 16, 128>}, {pipeline_mode = #tpu.pipeline_mode<synchronous>, transform_indices = @transform_1, window_bounds = array<i64: 128, 128>}, {pipeline_mode = #tpu.pipeline_mode<synchronous>, transform_indices = @transform_2, window_bounds = array<i64: 1, 128>}, {pipeline_mode = #tpu.pipeline_mode<synchronous>, transform_indices = @transform_3, window_bounds = array<i64: 128, 128>}, {pipeline_mode = #tpu.pipeline_mode<synchronous>, transform_indices = @transform_4, window_bounds = array<i64: 1, 128>}, {transform_indices = @transform_5, window_bounds = array<i64: 16, 128>}]} {
    %c0 = arith.constant 0 : index
    %c0_0 = arith.constant 0 : index
    %0 = vector.load %arg1[%c0, %c0_0] : memref<16x128xbf16, #tpu.memory_space<vmem>>, vector<16x128xbf16>
    %c0_1 = arith.constant 0 : index
    %c0_2 = arith.constant 0 : index
    %1 = vector.load %arg2[%c0_1, %c0_2] : memref<128x128xbf16, #tpu.memory_space<vmem>>, vector<128x128xbf16>
    %cst = arith.constant dense<0.000000e+00> : vector<16x128xf32>
    %2 = tpu.matmul %0, %1, %cst {dimension_numbers = #tpu.dot_dimension_numbers<[1], [1], [0], [0], [0, 0, 1, 0], [], []>} : vector<16x128xbf16>, vector<128x128xbf16>, vector<16x128xf32> -> vector<16x128xf32>
    %c0_3 = arith.constant 0 : index
    %c0_4 = arith.constant 0 : index
    %3 = vector.load %arg3[%c0_3, %c0_4] : memref<1x128xf32, #tpu.memory_space<vmem>>, vector<1x128xf32>
    %4 = vector.broadcast %3 : vector<1x128xf32> to vector<16x128xf32>
    %5 = arith.addf %2, %4 : vector<16x128xf32>
    %cst_5 = arith.constant 0.000000e+00 : f32
    %6 = vector.broadcast %cst_5 : f32 to vector<16x128xf32>
    %7 = arith.maximumf %5, %6 : vector<16x128xf32>
    %8 = arith.truncf %7 : vector<16x128xf32> to vector<16x128xbf16>
    %c0_6 = arith.constant 0 : index
    %c0_7 = arith.constant 0 : index
    %9 = vector.load %arg4[%c0_6, %c0_7] : memref<128x128xbf16, #tpu.memory_space<vmem>>, vector<128x128xbf16>
    %cst_8 = arith.constant dense<0.000000e+00> : vector<16x128xf32>
    %10 = tpu.matmul %8, %9, %cst_8 {dimension_numbers = #tpu.dot_dimension_numbers<[1], [1], [0], [0], [0, 0, 1, 0], [], []>} : vector<16x128xbf16>, vector<128x128xbf16>, vector<16x128xf32> -> vector<16x128xf32>
    %c0_9 = arith.constant 0 : index
    %c0_10 = arith.constant 0 : index
    %11 = vector.load %arg5[%c0_9, %c0_10] : memref<1x128xf32, #tpu.memory_space<vmem>>, vector<1x128xf32>
    %12 = vector.broadcast %11 : vector<1x128xf32> to vector<16x128xf32>
    %13 = arith.addf %10, %12 : vector<16x128xf32>
    %c0_11 = arith.constant 0 : index
    %c0_12 = arith.constant 0 : index
    %14 = vector.load %arg6[%c0_11, %c0_12] : memref<16x128xf32, #tpu.memory_space<vmem>>, vector<16x128xf32>
    tpu.vector_store %arg6[%c0_11, %c0_12], %13 {strides = array<i32>} : memref<16x128xf32, #tpu.memory_space<vmem>>, vector<16x128xf32>,
    return
  }
  func.func @transform_0(%arg0: i32) -> (i32, i32) {
    %c0_i32 = arith.constant 0 : i32
    %c0_i32_0 = arith.constant 0 : i32
    return %arg0, %c0_i32 : i32, i32
  }
  func.func @transform_1(%arg0: i32) -> (i32, i32) {
    %c0_i32 = arith.constant 0 : i32
    %c0_i32_0 = arith.constant 0 : i32
    %c0_i32_1 = arith.constant 0 : i32
    return %c0_i32, %c0_i32_0 : i32, i32
  }
  func.func @transform_2(%arg0: i32) -> (i32, i32) {
    %c0_i32 = arith.constant 0 : i32
    %c0_i32_0 = arith.constant 0 : i32
    %c0_i32_1 = arith.constant 0 : i32
    return %c0_i32, %c0_i32_0 : i32, i32
  }
  func.func @transform_3(%arg0: i32) -> (i32, i32) {
    %c0_i32 = arith.constant 0 : i32
    %c0_i32_0 = arith.constant 0 : i32
    %c0_i32_1 = arith.constant 0 : i32
    return %c0_i32, %c0_i32_0 : i32, i32
  }
  func.func @transform_4(%arg0: i32) -> (i32, i32) {
    %c0_i32 = arith.constant 0 : i32
    %c0_i32_0 = arith.constant 0 : i32
    %c0_i32_1 = arith.constant 0 : i32
    return %c0_i32, %c0_i32_0 : i32, i32
  }
  func.func @transform_5(%arg0: i32) -> (i32, i32) {
    %c0_i32 = arith.constant 0 : i32
    %c0_i32_0 = arith.constant 0 : i32
    return %arg0, %c0_i32 : i32, i32
  }
}

</mosaic_0001>

<bundles_post_ra>
// kernel: classification_head.1
= control target key start
LH: loop header
LB: loop body
LE: loop exit
PB: predicated region body
PF: predicated region fallthrough
CT: control target
= control target key end

     0   :  { %s381_s1 = inlined_call_operand.vmem [shape: bf16[128,128], index: 1, kind: input, shape index: {}]   ;;  %s382_s2 = inlined_call_operand.vmem [shape: f32[1,128], index: 2, kind: input, shape index: {}]   ;;  %s383_s3 = inlined_call_operand.vmem [shape: bf16[128,128], index: 3, kind: input, shape index: {}]   ;;  %s384_s0 = inlined_call_operand.vmem [shape: bf16[16,128], index: 0, kind: input, shape index: {}]   ;;  %s385_s4 = inlined_call_operand.vmem [shape: f32[1,128], index: 4, kind: input, shape index: {}]   ;;  %s386_s5 = inlined_call_operand.vmem [shape: f32[16,128], index: 5, kind: output, shape index: {}]  }
   0x1   :  { %v277_v0 = vld [vmem:[%s381_s1 + $0x38] sm:$0xff]  ;;  %v276_v1 = vld [vmem:[%s381_s1 + $0x30] sm:$0xff]  ;;  %v275_v2 = vld [vmem:[%s381_s1 + $0x28] sm:$0xff] }
   0x2   :  { %96 = vmatpush.bf16.xpose.msra.mxu0 %v277_v0  ;;  %v274_v3 = vld [vmem:[%s381_s1 + $0x20] sm:$0xff]  ;;  %v273_v4 = vld [vmem:[%s381_s1 + $0x18] sm:$0xff]  ;;  %v272_v6 = vld [vmem:[%s381_s1 + $0x10] sm:$0xff] }
   0x3   :  { %v285_v5 = vld [vmem:[%s383_s3 + $0x38] sm:$0xff]  ;;  %v284_v7 = vld [vmem:[%s383_s3 + $0x30] sm:$0xff]  ;;  %v271_v8 = vld [vmem:[%s381_s1 + $0x8] sm:$0xff] }
   0x4   :  { %181 = vmatpush.bf16.xpose.msra.mxu1 %v285_v5  ;;  %v283_v9 = vld [vmem:[%s383_s3 + $0x28] sm:$0xff]  ;;  %v270_v10 = vld [vmem:[%s381_s1] sm:$0xff]  ;;  %v281_v13 = vld [vmem:[%s383_s3 + $0x18] sm:$0xff] }
   0x5   :  { %v282_v11 = vld [vmem:[%s383_s3 + $0x20] sm:$0xff]  ;;  %v280_v14 = vld [vmem:[%s383_s3 + $0x10] sm:$0xff]  ;;  %v279_v15 = vld [vmem:[%s383_s3 + $0x8] sm:$0xff] }
   0x6   :  { %v269_v12 = vld [vmem:[%s384_s0] sm:$0xff] }
   0x7   :  { %v278_v16 = vld [vmem:[%s383_s3] sm:$0xff] }
   0x8   :  { %v286_v18 = vld [vmem:[%s382_s2] ss:$0 sm:$0xff] }
   0x9   :  { %v287_v25 = vld [vmem:[%s385_s4] ss:$0 sm:$0xff] }
   0xa   :  { %97 = vmatpush.bf16.xpose.msra.mxu0 %v276_v1 }
   0xc   :  { %182 = vmatpush.bf16.xpose.msra.mxu1 %v284_v7 }
  0x12   :  { %98 = vmatpush.bf16.xpose.msra.mxu0 %v275_v2 }
  0x14   :  { %183 = vmatpush.bf16.xpose.msra.mxu1 %v283_v9 }
  0x1a   :  { %99 = vmatpush.bf16.xpose.msra.mxu0 %v274_v3 }
  0x1c   :  { %184 = vmatpush.bf16.xpose.msra.mxu1 %v282_v11 }
  0x22   :  { %100 = vmatpush.bf16.xpose.msra.mxu0 %v273_v4 }
  0x24   :  { %185 = vmatpush.bf16.xpose.msra.mxu1 %v281_v13 }
  0x2a   :  { %101 = vmatpush.bf16.xpose.msra.mxu0 %v272_v6 }
  0x2c   :  { %186 = vmatpush.bf16.xpose.msra.mxu1 %v280_v14 }
  0x32   :  { %102 = vmatpush.bf16.xpose.msra.mxu0 %v271_v8 }
  0x34   :  { %187 = vmatpush.bf16.xpose.msra.mxu1 %v279_v15 }
  0x3a   :  { %103 = vmatpush.bf16.xpose.msra.mxu0 %v270_v10 }
  0x3c   :  { %188 = vmatpush.bf16.xpose.msra.mxu1 %v278_v16 }
  0x41   :  { %104 = vmatmul.bf16.vlgmr.msra.gmra.mxu0 %v269_v12 }
  0xbe   :  { %v105_v17 = vpop.f32.mrf.mxu0 }
  0xbf   :  { %v106_v19 = vadd.f32 %v286_v18, %v105_v17 }
  0xc1   :  { %v110_v22 = vmax.f32 %v106_v19, 0.0 }
  0xc6   :  { %v107_v20 = vpop.f32.mrf.mxu0 }
  0xc7   :  { %v108_v21 = vadd.f32 %v286_v18, %v107_v20 }
  0xc9   :  { %v111_v23 = vmax.f32 %v108_v21, 0.0 }
  0xcb   :  { %v112_v24 = vpack.c.bf16 %v111_v23, %v110_v22 }
  0xcd   :  { %189 = vmatmul.bf16.vlgmr.msra.gmra.mxu1 %v112_v24 }
 0x14a   :  { %v190_v26 = vpop.f32.mrf.mxu1 }
 0x14b   :  { %v191_v27 = vadd.f32 %v287_v25, %v190_v26 }
 0x14d   :  { %195 = vst [vmem:[%s386_s5] sm:$0xff] %v191_v27 }
 0x152   :  { %v192_v28 = vpop.f32.mrf.mxu1 }
 0x153   :  { %v193_v29 = vadd.f32 %v287_v25, %v192_v28 }
 0x155   :  { %196 = vst [vmem:[%s386_s5 + $0x8] sm:$0xff] %v193_v29 }

</bundles_post_ra>
